<compile_context>
chip_gen: v7x
topology: tpu7x:2x2x1
jax: 0.10.0
libtpu: 0.0.40
codegen_flags: <defaults>
</compile_context>

<pallas_src>
import jax
import jax.numpy as jnp
from jax.experimental import pallas as pl
from jax.experimental.pallas import tpu as pltpu

# ----------------------------- problem sizes --------------------------------
B = 2          # batch
S_A = 8        # audio sequence length
S_T = 8        # text sequence length
D_A = 16       # raw audio feature dim
D_T = 24       # raw text feature dim
HIDDEN = 32    # hidden_size (must stay a multiple of 8 for the w1 split slices)
MLP_DIM = 256  # fixed inner classifier width (from the module)
CLASS_NUM = 10

C_PAD = 128                       # lane-dense classifier width
B_PAD = max(8, ((B + 7) // 8) * 8)  # pad batch rows to a full sublane group


# ------------------------------ Pallas kernel -------------------------------
def audio_text_kernel(
    audio_ref,   # (B_PAD, S_A, D_A)
    text_ref,    # (B_PAD, S_T, D_T)
    wa_ref,      # (D_A, H)      audio extractor weight
    wt_ref,      # (D_T, H)      text  extractor weight
    w1_ref,      # (2H, H)       fusion Linear weight
    w2_ref,      # (H, 256)      classifier Linear 1 weight
    w3_ref,      # (256, C_PAD)  classifier Linear 2 weight (zero-padded cols)
    bias_ref,    # (8, 256)      packed biases: rows = [ba, bt, b1, b2, b3_pad]
    out_ref,     # (B_PAD, C_PAD)
):
    f32 = jnp.float32
    H = wa_ref.shape[1]

    # Packed biases (static slices).
    ba = bias_ref[0:1, 0:H]        # (1, H)
    bt = bias_ref[1:2, 0:H]        # (1, H)
    b1 = bias_ref[2:3, 0:H]        # (1, H)
    b2 = bias_ref[3:4, :]          # (1, 256)
    b3 = bias_ref[4:5, 0:C_PAD]    # (1, C_PAD)

    # ---- mean-pool folded through the linear extractors ---------------------
    # mean_s(X W + b) == mean_s(X) W + b   (extractor is linear)
    audio_mean = jnp.mean(audio_ref[...], axis=1)    # (B_PAD, D_A)
    text_mean = jnp.mean(text_ref[...], axis=1)      # (B_PAD, D_T)

    averaged_audio = (
        jnp.dot(audio_mean, wa_ref[...], preferred_element_type=f32) + ba
    )                                                # (B_PAD, H)
    averaged_text = (
        jnp.dot(text_mean, wt_ref[...], preferred_element_type=f32) + bt
    )                                                # (B_PAD, H)

    # ---- modality fusion: concat([audio, text]) @ W1 + b1 --------------------
    # Expressed as a split matmul (numerically identical, avoids lane concat).
    w1_a = w1_ref[0:H, :]                            # (H, H)
    w1_t = w1_ref[H:2 * H, :]                        # (H, H)
    fused = (jnp.dot(averaged_audio, w1_a, preferred_element_type=f32)
             + jnp.dot(averaged_text, w1_t, preferred_element_type=f32)
             + b1)
    fused = jnp.maximum(fused, 0.0)                  # ReLU
    # Dropout(0.3): identity in inference mode.
    # TODO(synk): training-mode dropout (stateful PRNG mask) intentionally omitted.

    # ---- output classifier ----------------------------------------------------
    h = jnp.dot(fused, w2_ref[...], preferred_element_type=f32) + b2
    h = jnp.maximum(h, 0.0)                          # ReLU
    # Dropout(0.3): identity in inference mode.
    logits = jnp.dot(h, w3_ref[...], preferred_element_type=f32) + b3  # (B_PAD, C_PAD)

    out_ref[...] = logits.astype(out_ref.dtype)


# ------------------------------- wrapper -------------------------------------
def _pack_params(params):
    """Zero-pad w3/b3 to C_PAD columns and pack all biases into one (8,256)."""
    w3_pad = jnp.pad(params["w3"], ((0, 0), (0, C_PAD - CLASS_NUM)))
    b3_pad = jnp.pad(params["b3"][0], (0, C_PAD - CLASS_NUM))

    bias_pack = jnp.zeros((8, MLP_DIM), jnp.float32)
    bias_pack = bias_pack.at[0, :HIDDEN].set(params["ba"][0])
    bias_pack = bias_pack.at[1, :HIDDEN].set(params["bt"][0])
    bias_pack = bias_pack.at[2, :HIDDEN].set(params["b1"][0])
    bias_pack = bias_pack.at[3, :].set(params["b2"][0])
    bias_pack = bias_pack.at[4, :C_PAD].set(b3_pad)
    return w3_pad, bias_pack


@jax.jit
def audio_textual_model(audio, text, params):
    """audio: (B, S_A, D_A), text: (B, S_T, D_T), params: dict of weights."""
    b_in = audio.shape[0]

    # Pad batch rows to a full sublane group (zeros; extra rows sliced off).
    audio_p = jnp.pad(audio, ((0, B_PAD - b_in), (0, 0), (0, 0)))
    text_p = jnp.pad(text, ((0, B_PAD - b_in), (0, 0), (0, 0)))

    w3_pad, bias_pack = _pack_params(params)

    args = (
        audio_p, text_p,
        params["wa"], params["wt"],
        params["w1"], params["w2"], w3_pad,
        bias_pack,
    )
    vmem = pltpu.MemorySpace.VMEM
    out_padded = pl.pallas_call(
        audio_text_kernel,
        out_shape=jax.ShapeDtypeStruct((B_PAD, C_PAD), jnp.float32),
        in_specs=[pl.BlockSpec(memory_space=vmem) for _ in args],
        out_specs=pl.BlockSpec(memory_space=vmem),
    )(*args)

    return out_padded[:b_in, :CLASS_NUM]


# --------------------------- deterministic params ----------------------------
def make_params(key):
    ks = jax.random.split(key, 10)
    scale = 0.05
    return {
        "wa": scale * jax.random.normal(ks[0], (D_A, HIDDEN), jnp.float32),
        "ba": scale * jax.random.normal(ks[1], (1, HIDDEN), jnp.float32),
        "wt": scale * jax.random.normal(ks[2], (D_T, HIDDEN), jnp.float32),
        "bt": scale * jax.random.normal(ks[3], (1, HIDDEN), jnp.float32),
        "w1": scale * jax.random.normal(ks[4], (2 * HIDDEN, HIDDEN), jnp.float32),
        "b1": scale * jax.random.normal(ks[5], (1, HIDDEN), jnp.float32),
        "w2": scale * jax.random.normal(ks[6], (HIDDEN, MLP_DIM), jnp.float32),
        "b2": scale * jax.random.normal(ks[7], (1, MLP_DIM), jnp.float32),
        "w3": scale * jax.random.normal(ks[8], (MLP_DIM, CLASS_NUM), jnp.float32),
        "b3": scale * jax.random.normal(ks[9], (1, CLASS_NUM), jnp.float32),
    }


# ------------------------------ reference (JAX) ------------------------------
def reference_forward(audio, text, p):
    af = jnp.einsum("bsd,dh->bsh", audio, p["wa"]) + p["ba"]
    tf = jnp.einsum("bsd,dh->bsh", text, p["wt"]) + p["bt"]
    a = af.mean(axis=1)
    t = tf.mean(axis=1)
    cat = jnp.concatenate([a, t], axis=-1)
    fused = jax.nn.relu(cat @ p["w1"] + p["b1"])
    h = jax.nn.relu(fused @ p["w2"] + p["b2"])
    return h @ p["w3"] + p["b3"]


if __name__ == "__main__":
    key = jax.random.PRNGKey(0)
    k_audio, k_text, k_params = jax.random.split(key, 3)

    audio = jax.random.normal(k_audio, (B, S_A, D_A), jnp.float32)
    text = jax.random.normal(k_text, (B, S_T, D_T), jnp.float32)
    params = make_params(k_params)

    out = audio_textual_model(audio, text, params)
    out = jax.block_until_ready(out)

    ref = reference_forward(audio, text, params)
    assert out.shape == (B, CLASS_NUM), out.shape
    assert jnp.allclose(out, ref, atol=1e-4, rtol=1e-4), "mismatch vs reference"

    print("KERNEL_OK")
</pallas_src>

<mosaic_0001>
module attributes {stable_mosaic.version = 11 : i64} {
  func.func @audio_text_kernel(%arg0: memref<8x8x16xf32, #tpu.memory_space<vmem>>, %arg1: memref<8x8x24xf32, #tpu.memory_space<vmem>>, %arg2: memref<16x32xf32, #tpu.memory_space<vmem>>, %arg3: memref<24x32xf32, #tpu.memory_space<vmem>>, %arg4: memref<64x32xf32, #tpu.memory_space<vmem>>, %arg5: memref<32x256xf32, #tpu.memory_space<vmem>>, %arg6: memref<256x128xf32, #tpu.memory_space<vmem>>, %arg7: memref<8x256xf32, #tpu.memory_space<vmem>>, %arg8: memref<8x128xf32, #tpu.memory_space<vmem>>) attributes {dimension_semantics = [], scalar_prefetch = 0 : i64, scratch_operands = 0 : i64, tpu.core_type = #tpu.core_type<tc>} {
    %c0 = arith.constant 0 : index
    %c0_0 = arith.constant 0 : index
    %0 = vector.load %arg7[%c0, %c0_0] : memref<8x256xf32, #tpu.memory_space<vmem>>, vector<1x32xf32>
    %c1 = arith.constant 1 : index
    %c0_1 = arith.constant 0 : index
    %1 = vector.load %arg7[%c1, %c0_1] : memref<8x256xf32, #tpu.memory_space<vmem>>, vector<1x32xf32>
    %c2 = arith.constant 2 : index
    %c0_2 = arith.constant 0 : index
    %2 = vector.load %arg7[%c2, %c0_2] : memref<8x256xf32, #tpu.memory_space<vmem>>, vector<1x32xf32>
    %c3 = arith.constant 3 : index
    %c0_3 = arith.constant 0 : index
    %3 = vector.load %arg7[%c3, %c0_3] : memref<8x256xf32, #tpu.memory_space<vmem>>, vector<1x256xf32>
    %c4 = arith.constant 4 : index
    %c0_4 = arith.constant 0 : index
    %4 = vector.load %arg7[%c4, %c0_4] : memref<8x256xf32, #tpu.memory_space<vmem>>, vector<1x128xf32>
    %c0_5 = arith.constant 0 : index
    %c0_6 = arith.constant 0 : index
    %c0_7 = arith.constant 0 : index
    %5 = vector.load %arg0[%c0_5, %c0_6, %c0_7] : memref<8x8x16xf32, #tpu.memory_space<vmem>>, vector<8x8x16xf32>
    %cst = arith.constant dense<0.000000e+00> : vector<8x16xf32>
    %6 = vector.multi_reduction <add>, %5, %cst [1] : vector<8x8x16xf32> to vector<8x16xf32>
    %cst_8 = arith.constant 8.000000e+00 : f32
    %7 = vector.broadcast %cst_8 : f32 to vector<8x16xf32>
    %8 = arith.divf %6, %7 : vector<8x16xf32>
    %c0_9 = arith.constant 0 : index
    %c0_10 = arith.constant 0 : index
    %c0_11 = arith.constant 0 : index
    %9 = vector.load %arg1[%c0_9, %c0_10, %c0_11] : memref<8x8x24xf32, #tpu.memory_space<vmem>>, vector<8x8x24xf32>
    %cst_12 = arith.constant dense<0.000000e+00> : vector<8x24xf32>
    %10 = vector.multi_reduction <add>, %9, %cst_12 [1] : vector<8x8x24xf32> to vector<8x24xf32>
    %cst_13 = arith.constant 8.000000e+00 : f32
    %11 = vector.broadcast %cst_13 : f32 to vector<8x24xf32>
    %12 = arith.divf %10, %11 : vector<8x24xf32>
    %c0_14 = arith.constant 0 : index
    %c0_15 = arith.constant 0 : index
    %13 = vector.load %arg2[%c0_14, %c0_15] : memref<16x32xf32, #tpu.memory_space<vmem>>, vector<16x32xf32>
    %cst_16 = arith.constant dense<0.000000e+00> : vector<8x32xf32>
    %14 = tpu.matmul %8, %13, %cst_16 {dimension_numbers = #tpu.dot_dimension_numbers<[1], [0], [0], [1], [0, 0, 1, 1], [], []>} : vector<8x16xf32>, vector<16x32xf32>, vector<8x32xf32> -> vector<8x32xf32>
    %15 = vector.broadcast %0 : vector<1x32xf32> to vector<8x32xf32>
    %16 = arith.addf %14, %15 : vector<8x32xf32>
    %c0_17 = arith.constant 0 : index
    %c0_18 = arith.constant 0 : index
    %17 = vector.load %arg3[%c0_17, %c0_18] : memref<24x32xf32, #tpu.memory_space<vmem>>, vector<24x32xf32>
    %cst_19 = arith.constant dense<0.000000e+00> : vector<8x32xf32>
    %18 = tpu.matmul %12, %17, %cst_19 {dimension_numbers = #tpu.dot_dimension_numbers<[1], [0], [0], [1], [0, 0, 1, 1], [], []>} : vector<8x24xf32>, vector<24x32xf32>, vector<8x32xf32> -> vector<8x32xf32>
    %19 = vector.broadcast %1 : vector<1x32xf32> to vector<8x32xf32>
    %20 = arith.addf %18, %19 : vector<8x32xf32>
    %c0_20 = arith.constant 0 : index
    %c0_21 = arith.constant 0 : index
    %21 = vector.load %arg4[%c0_20, %c0_21] : memref<64x32xf32, #tpu.memory_space<vmem>>, vector<32x32xf32>
    %c32 = arith.constant 32 : index
    %c0_22 = arith.constant 0 : index
    %22 = vector.load %arg4[%c32, %c0_22] : memref<64x32xf32, #tpu.memory_space<vmem>>, vector<32x32xf32>
    %cst_23 = arith.constant dense<0.000000e+00> : vector<8x32xf32>
    %23 = tpu.matmul %16, %21, %cst_23 {dimension_numbers = #tpu.dot_dimension_numbers<[1], [0], [0], [1], [0, 0, 1, 1], [], []>} : vector<8x32xf32>, vector<32x32xf32>, vector<8x32xf32> -> vector<8x32xf32>
    %cst_24 = arith.constant dense<0.000000e+00> : vector<8x32xf32>
    %24 = tpu.matmul %20, %22, %cst_24 {dimension_numbers = #tpu.dot_dimension_numbers<[1], [0], [0], [1], [0, 0, 1, 1], [], []>} : vector<8x32xf32>, vector<32x32xf32>, vector<8x32xf32> -> vector<8x32xf32>
    %25 = arith.addf %23, %24 : vector<8x32xf32>
    %26 = vector.broadcast %2 : vector<1x32xf32> to vector<8x32xf32>
    %27 = arith.addf %25, %26 : vector<8x32xf32>
    %cst_25 = arith.constant 0.000000e+00 : f32
    %28 = vector.broadcast %cst_25 : f32 to vector<8x32xf32>
    %29 = arith.maximumf %27, %28 : vector<8x32xf32>
    %c0_26 = arith.constant 0 : index
    %c0_27 = arith.constant 0 : index
    %30 = vector.load %arg5[%c0_26, %c0_27] : memref<32x256xf32, #tpu.memory_space<vmem>>, vector<32x256xf32>
    %cst_28 = arith.constant dense<0.000000e+00> : vector<8x256xf32>
    %31 = tpu.matmul %29, %30, %cst_28 {dimension_numbers = #tpu.dot_dimension_numbers<[1], [0], [0], [1], [0, 0, 1, 1], [], []>} : vector<8x32xf32>, vector<32x256xf32>, vector<8x256xf32> -> vector<8x256xf32>
    %32 = vector.broadcast %3 : vector<1x256xf32> to vector<8x256xf32>
    %33 = arith.addf %31, %32 : vector<8x256xf32>
    %cst_29 = arith.constant 0.000000e+00 : f32
    %34 = vector.broadcast %cst_29 : f32 to vector<8x256xf32>
    %35 = arith.maximumf %33, %34 : vector<8x256xf32>
    %c0_30 = arith.constant 0 : index
    %c0_31 = arith.constant 0 : index
    %36 = vector.load %arg6[%c0_30, %c0_31] : memref<256x128xf32, #tpu.memory_space<vmem>>, vector<256x128xf32>
    %cst_32 = arith.constant dense<0.000000e+00> : vector<8x128xf32>
    %37 = tpu.matmul %35, %36, %cst_32 {dimension_numbers = #tpu.dot_dimension_numbers<[1], [0], [0], [1], [0, 0, 1, 1], [], []>} : vector<8x256xf32>, vector<256x128xf32>, vector<8x128xf32> -> vector<8x128xf32>
    %38 = vector.broadcast %4 : vector<1x128xf32> to vector<8x128xf32>
    %39 = arith.addf %37, %38 : vector<8x128xf32>
    %c0_33 = arith.constant 0 : index
    %c0_34 = arith.constant 0 : index
    %40 = vector.load %arg8[%c0_33, %c0_34] : memref<8x128xf32, #tpu.memory_space<vmem>>, vector<8x128xf32>
    tpu.vector_store %arg8[%c0_33, %c0_34], %39 {strides = array<i32>} : memref<8x128xf32, #tpu.memory_space<vmem>>, vector<8x128xf32>,
    return
  }
}

</mosaic_0001>

<bundles_post_ra>
// kernel: audio_textual_model.1
= control target key start
LH: loop header
LB: loop body
LE: loop exit
PB: predicated region body
PF: predicated region fallthrough
CT: control target
= control target key end

     0   :  { %vm43_vm0 = vcmask 130048   ;;  %v884_v0 = vmov 0.0|0.0   ;;  %vm885_vm1 = vmmov 0   ;;  %v886_v3 = vmov 0.0   ;;  %s1208_s2 = inlined_call_operand.vmem [shape: f32[16,32], index: 2, kind: input, shape index: {}]   ;;  %s1209_s0 = inlined_call_operand.vmem [shape: f32[8,8,16], index: 0, kind: input, shape index: {}]   ;;  %s1210_s3 = inlined_call_operand.vmem [shape: f32[24,32], index: 3, kind: input, shape index: {}]   ;;  %s1211_s1 = inlined_call_operand.vmem [shape: f32[8,8,24], index: 1, kind: input, shape index: {}]   ;;  %s1212_s4 = inlined_call_operand.vmem [shape: f32[64,32], index: 4, kind: input, shape index: {}]   ;;  %s1213_s7 = inlined_call_operand.vmem [shape: f32[8,256], index: 7, kind: input, shape index: {}]   ;;  %s1214_s5 = inlined_call_operand.vmem [shape: f32[32,256], index: 5, kind: input, shape index: {}]   ;;  %s1215_s6 = inlined_call_operand.vmem [shape: f32[256,128], index: 6, kind: input, shape index: {}]   ;;  %s1216_s8 = inlined_call_operand.vmem [shape: f32[8,128], index: 8, kind: output, shape index: {}]  }
   0x1   :  { %823 = vmatprep.subr.bf16.mxu0 %v884_v0  ;;  %v182_v1 = vld [vmem:[%s1208_s2] sm:$0xff]  ;;  %v183_v2 = vld [vmem:[%s1208_s2 + $0x8] sm:$0xff]  ;;  %789 = vmatprep.mubr.msk.f32.mxu0 %vm885_vm1, %v886_v3  ;;  %v37_v7 = vld [vmem:[%s1209_s0 + $0x10] sm:$0xff]  ;;  %vm192_vm2 = vcmask 1041409   ;;  %vm194_vm3 = vcmask 1042434   ;;  %vm196_vm4 = vcmask 1043459  }
   0x2   :  { %v35_v4 = vld [vmem:[%s1209_s0] sm:$0xff]  ;;  %v824_v5 = vpack.c.bf16 %v183_v2, %v182_v1  ;;  %v36_v6 = vld [vmem:[%s1209_s0 + $0x8] sm:$0xff]  ;;  %v38_v8 = vld [vmem:[%s1209_s0 + $0x18] sm:$0xff]  ;;  %v58_v15 = vsel %vm43_vm0, %v37_v7, 0.0  ;;  %vm198_vm5 = vcmask 1044484   ;;  %vm200_vm6 = vcmask 1045509  }
   0x3   :  { %v44_v9 = vsel %vm43_vm0, %v35_v4, 0.0  ;;  %v39_v10 = vld [vmem:[%s1209_s0 + $0x20] sm:$0xff]  ;;  %v40_v11 = vld [vmem:[%s1209_s0 + $0x28] sm:$0xff]  ;;  %v41_v12 = vld [vmem:[%s1209_s0 + $0x30] sm:$0xff]  ;;  %v51_v14 = vsel %vm43_vm0, %v36_v6, 0.0  ;;  %v59_v17 = vrot.slane %v58_v15, 4 }
   0x4   :  { %v45_v13 = vrot.slane %v44_v9, 4  ;;  %825 = vmatpush3.bf16.msra.mxu0 %v824_v5  ;;  %v52_v16 = vrot.slane %v51_v14, 4  ;;  %v65_v18 = vsel %vm43_vm0, %v38_v8, 0.0  ;;  %v72_v19 = vsel %vm43_vm0, %v39_v10, 0.0  ;;  %v42_v20 = vld [vmem:[%s1209_s0 + $0x38] sm:$0xff]  ;;  %v278_v7 = vld [vmem:[%s1210_s3] sm:$0xff] }
   0x5   :  { %826 = vmatprep.subr.bf16.mxu0 %v884_v0  ;;  %v66_v22 = vrot.slane %v65_v18, 4  ;;  %v73_v23 = vrot.slane %v72_v19, 4  ;;  %v79_v24 = vsel %vm43_vm0, %v40_v11, 0.0  ;;  %v60_v26 = vadd.f32 %v59_v17, %v58_v15  ;;  %v279_v8 = vld [vmem:[%s1210_s3 + $0x8] sm:$0xff]  ;;  %v111_v17 = vld [vmem:[%s1211_s1 + $0x10] sm:$0xff] }
   0x6   :  { %v46_v21 = vadd.f32 %v45_v13, %v44_v9  ;;  %v53_v25 = vadd.f32 %v52_v16, %v51_v14  ;;  %v80_v27 = vrot.slane %v79_v24, 4  ;;  %v86_v28 = vsel %vm43_vm0, %v41_v12, 0.0  ;;  %v109_v12 = vld [vmem:[%s1211_s1] sm:$0xff]  ;;  %v110_v13 = vld [vmem:[%s1211_s1 + $0x8] sm:$0xff] }
   0x7   :  { %v67_v30 = vadd.f32 %v66_v22, %v65_v18  ;;  %v74_v31 = vadd.f32 %v73_v23, %v72_v19  ;;  %v87_v32 = vrot.slane %v86_v28, 4  ;;  %v61_v34 = vrot.slane %v60_v26, 2 }
   0x8   :  { %v47_v29 = vrot.slane %v46_v21, 2  ;;  %v54_v33 = vrot.slane %v53_v25, 2  ;;  %v81_v35 = vadd.f32 %v80_v27, %v79_v24  ;;  %v93_v36 = vsel %vm43_vm0, %v42_v20, 0.0  ;;  %v113_v27 = vld [vmem:[%s1211_s1 + $0x20] sm:$0xff] }
   0x9   :  { %v68_v38 = vrot.slane %v67_v30, 2  ;;  %v75_v39 = vrot.slane %v74_v31, 2  ;;  %v88_v40 = vadd.f32 %v87_v32, %v86_v28  ;;  %v62_v42 = vadd.f32 %v61_v34, %v60_v26  ;;  %v114_v28 = vld [vmem:[%s1211_s1 + $0x28] sm:$0xff] }
   0xa   :  { %v48_v37 = vadd.f32 %v47_v29, %v46_v21  ;;  %v55_v41 = vadd.f32 %v54_v33, %v53_v25  ;;  %v82_v43 = vrot.slane %v81_v35, 2  ;;  %v94_v44 = vrot.slane %v93_v36, 4  ;;  %v112_v21 = vld [vmem:[%s1211_s1 + $0x18] sm:$0xff] }
   0xb   :  { %v69_v46 = vadd.f32 %v68_v38, %v67_v30  ;;  %v76_v47 = vadd.f32 %v75_v39, %v74_v31  ;;  %v89_v48 = vrot.slane %v88_v40, 2  ;;  %v63_v50 = vrot.slane %v62_v42, 1  ;;  %v116_v38 = vld [vmem:[%s1211_s1 + $0x38] sm:$0xff] }
   0xc   :  { %v49_v45 = vrot.slane %v48_v37, 1  ;;  %v56_v49 = vrot.slane %v55_v41, 1  ;;  %v83_v51 = vadd.f32 %v82_v43, %v81_v35  ;;  %v95_v52 = vadd.f32 %v94_v44, %v93_v36 }
   0xd   :  { %v70_v54 = vrot.slane %v69_v46, 1  ;;  %v77_v55 = vrot.slane %v76_v47, 1  ;;  %v90_v56 = vadd.f32 %v89_v48, %v88_v40  ;;  %v64_v58 = vadd.f32 %v63_v50, %v62_v42 }
   0xe   :  { %v50_v53 = vadd.f32 %v49_v45, %v48_v37  ;;  %v57_v57 = vadd.f32 %v56_v49, %v55_v41  ;;  %v84_v59 = vrot.slane %v83_v51, 1  ;;  %v96_v60 = vrot.slane %v95_v52, 2  ;;  %v115_v37 = vld [vmem:[%s1211_s1 + $0x30] sm:$0xff] }
   0xf   :  { %v71_v61 = vadd.f32 %v70_v54, %v69_v46  ;;  %v78_v62 = vadd.f32 %v77_v55, %v76_v47  ;;  %v91_v63 = vrot.slane %v90_v56, 1  ;;  %v103_v6 = vmul.f32 0.125, %v64_v58  ;;  %v280_v54 = vld [vmem:[%s1210_s3 + $0x10] sm:$0xff] }
  0x10   :  { %v101_v1 = vmul.f32 0.125, %v50_v53  ;;  %v85_v2 = vadd.f32 %v84_v59, %v83_v51  ;;  %v97_v4 = vadd.f32 %v96_v60, %v95_v52  ;;  %v102_v5 = vmul.f32 0.125, %v57_v57 }
  0x11   :  { %v92_v9 = vadd.f32 %v91_v63, %v90_v56  ;;  %v104_v10 = vmul.f32 0.125, %v71_v61  ;;  %v105_v11 = vmul.f32 0.125, %v78_v62  ;;  %vm202_vm7 = vcmask 1046534  }
  0x12   :  { %v98_v14 = vrot.slane %v97_v4, 1  ;;  %v106_v15 = vmul.f32 0.125, %v85_v2  ;;  %v193_v16 = vsel %vm192_vm2, %v102_v5, %v101_v1  ;;  %vm204_vm8 = vcmask 1047559  }
  0x13   :  { %v107_v18 = vmul.f32 0.125, %v92_v9  ;;  %v195_v19 = vsel %vm194_vm3, %v103_v6, %v193_v16  ;;  %v827_v20 = vpack.c.bf16 %v279_v8, %v278_v7  ;;  %vm117_vm9 = vcmask 195584  }
  0x14   :  { %v99_v22 = vadd.f32 %v98_v14, %v97_v4  ;;  %v197_v23 = vsel %vm196_vm4, %v104_v10, %v195_v19  ;;  %v118_v24 = vsel %vm117_vm9, %v109_v12, 0.0  ;;  %v125_v25 = vsel %vm117_vm9, %v110_v13, 0.0 }
  0x15   :  { %v199_v26 = vsel %vm198_vm5, %v105_v11, %v197_v23  ;;  %v119_v29 = vrot.slane %v118_v24, 4  ;;  %v126_v30 = vrot.slane %v125_v25, 4  ;;  %v132_v31 = vsel %vm117_vm9, %v111_v17, 0.0 }
  0x16   :  { %v108_v32 = vmul.f32 0.125, %v99_v22  ;;  %v201_v33 = vsel %vm200_vm6, %v106_v15, %v199_v26  ;;  %v133_v34 = vrot.slane %v132_v31, 4  ;;  %v139_v35 = vsel %vm117_vm9, %v112_v21, 0.0 }
  0x17   :  { %v203_v36 = vsel %vm202_vm7, %v107_v18, %v201_v33  ;;  %v120_v39 = vadd.f32 %v119_v29, %v118_v24  ;;  %v127_v40 = vadd.f32 %v126_v30, %v125_v25  ;;  %v140_v41 = vrot.slane %v139_v35, 4 }
  0x18   :  { %v205_v42 = vsel %vm204_vm8, %v108_v32, %v203_v36  ;;  %v134_v43 = vadd.f32 %v133_v34, %v132_v31  ;;  %v146_v44 = vsel %vm117_vm9, %v113_v27, 0.0  ;;  %v153_v45 = vsel %vm117_vm9, %v114_v28, 0.0 }
  0x19   :  { %790 = vmatmul.mubr.msk.f32.vlgmr.msra.gmra.mrb[0].mxu0 %vm43_vm0, %v205_v42  ;;  %v121_v46 = vrot.slane %v120_v39, 2  ;;  %v128_v47 = vrot.slane %v127_v40, 2  ;;  %v141_v48 = vadd.f32 %v140_v41, %v139_v35  ;;  %v147_v49 = vrot.slane %v146_v44, 4 }
  0x1a   :  { %828 = vmatpush3.bf16.msra.mxu0 %v827_v20  ;;  %798 = vmatprep.mubr.msk.f32.mxu0 %vm885_vm1, %v886_v3  ;;  %v135_v50 = vrot.slane %v134_v43, 2  ;;  %v154_v51 = vrot.slane %v153_v45, 4  ;;  %v160_v52 = vsel %vm117_vm9, %v115_v37, 0.0  ;;  %v167_v53 = vsel %vm117_vm9, %v116_v38, 0.0 }
  0x1b   :  { %796 = vmatprep.subr.mxu0 %v886_v3  ;;  %v122_v55 = vadd.f32 %v121_v46, %v120_v39  ;;  %v129_v56 = vadd.f32 %v128_v47, %v127_v40  ;;  %v142_v57 = vrot.slane %v141_v48, 2  ;;  %v148_v58 = vadd.f32 %v147_v49, %v146_v44  ;;  %v373_v44 = vld [vmem:[%s1212_s4 + $0x28] sm:$0xff]  ;;  %v375_v47 = vld [vmem:[%s1212_s4 + $0x38] sm:$0xff] }
  0x1c   :  { %v136_v59 = vadd.f32 %v135_v50, %v134_v43  ;;  %v155_v60 = vadd.f32 %v154_v51, %v153_v45  ;;  %v161_v61 = vrot.slane %v160_v52, 4  ;;  %v168_v62 = vrot.slane %v167_v53, 4  ;;  %v372_v43 = vld [vmem:[%s1212_s4 + $0x20] sm:$0xff]  ;;  %v374_v45 = vld [vmem:[%s1212_s4 + $0x30] sm:$0xff] }
  0x1d   :  { %v123_v63 = vrot.slane %v122_v55, 1  ;;  %v130_v1 = vrot.slane %v129_v56, 1  ;;  %v143_v2 = vadd.f32 %v142_v57, %v141_v48  ;;  %v149_v4 = vrot.slane %v148_v58, 2  ;;  %v368_v51 = vld [vmem:[%s1212_s4] sm:$0xff] }
  0x1e   :  { %797 = vmatpush3.msra.mxu0 %v280_v54  ;;  %v137_v5 = vrot.slane %v136_v59, 1  ;;  %v156_v6 = vrot.slane %v155_v60, 2  ;;  %v162_v7 = vadd.f32 %v161_v61, %v160_v52  ;;  %v169_v8 = vadd.f32 %v168_v62, %v167_v53  ;;  %v369_v52 = vld [vmem:[%s1212_s4 + $0x8] sm:$0xff]  ;;  %v30_v53 = vld [vmem:[%s1213_s7 + $0x1] ss:$0 sm:$0xff] }
  0x1f   :  { %v124_v9 = vadd.f32 %v123_v63, %v122_v55  ;;  %v131_v10 = vadd.f32 %v130_v1, %v129_v56  ;;  %v144_v11 = vrot.slane %v143_v2, 1  ;;  %v150_v12 = vadd.f32 %v149_v4, %v148_v58  ;;  %829 = vmatprep.subr.bf16.mxu0 %v884_v0  ;;  %v370_v58 = vld [vmem:[%s1212_s4 + $0x10] sm:$0xff]  ;;  %v29_v61 = vld [vmem:[%s1213_s7] ss:$0 sm:$0xff]  ;;  %v526_v63 = vld [vmem:[%s1214_s5 + $0x8] sm:$0xff] }
  0x20   :  { %v138_v13 = vadd.f32 %v137_v5, %v136_v59  ;;  %v157_v14 = vadd.f32 %v156_v6, %v155_v60  ;;  %v163_v15 = vrot.slane %v162_v7, 2  ;;  %v170_v16 = vrot.slane %v169_v8, 2  ;;  %v371_v59 = vld [vmem:[%s1212_s4 + $0x18] sm:$0xff]  ;;  %v527_v4 = vld [vmem:[%s1214_s5 + $0x10] sm:$0xff] }
  0x21   :  { %v145_v17 = vadd.f32 %v144_v11, %v143_v2  ;;  %v151_v18 = vrot.slane %v150_v12, 1  ;;  %v174_v19 = vmul.f32 0.125, %v124_v9  ;;  %v175_v20 = vmul.f32 0.125, %v131_v10  ;;  %v528_v1 = vld [vmem:[%s1214_s5 + $0x18] sm:$0xff]  ;;  %v531_v9 = vld [vmem:[%s1214_s5 + $0x30] sm:$0xff]  ;;  %v636_v11 = vld [vmem:[%s1215_s6 + $0x80] sm:$0xff] }
  0x22   :  { %v158_v21 = vrot.slane %v157_v14, 1  ;;  %v164_v22 = vadd.f32 %v163_v15, %v162_v7  ;;  %v171_v23 = vadd.f32 %v170_v16, %v169_v8  ;;  %v176_v24 = vmul.f32 0.125, %v138_v13  ;;  %v532_v6 = vld [vmem:[%s1214_s5 + $0x38] sm:$0xff]  ;;  %v529_v8 = vld [vmem:[%s1214_s5 + $0x20] sm:$0xff]  ;;  %v621_v15 = vld [vmem:[%s1215_s6 + $0x8] sm:$0xff] }
  0x23   :  { %v152_v25 = vadd.f32 %v151_v18, %v150_v12  ;;  %v177_v26 = vmul.f32 0.125, %v145_v17  ;;  %v289_v27 = vsel %vm192_vm2, %v175_v20, %v174_v19  ;;  %v830_v46 = vpack.c.bf16 %v373_v44, %v372_v43  ;;  %v637_v12 = vld [vmem:[%s1215_s6 + $0x88] sm:$0xff]  ;;  %v620_v13 = vld [vmem:[%s1215_s6] sm:$0xff]  ;;  %v638_v16 = vld [vmem:[%s1215_s6 + $0x90] sm:$0xff] }
  0x24   :  { %v159_v28 = vadd.f32 %v158_v21, %v157_v14  ;;  %v165_v29 = vrot.slane %v164_v22, 1  ;;  %v172_v30 = vrot.slane %v171_v23, 1  ;;  %v290_v31 = vsel %vm194_vm3, %v176_v24, %v289_v27  ;;  %v639_v17 = vld [vmem:[%s1215_s6 + $0x98] sm:$0xff]  ;;  %v622_v20 = vld [vmem:[%s1215_s6 + $0x10] sm:$0xff]  ;;  %v625_v27 = vld [vmem:[%s1215_s6 + $0x28] sm:$0xff] }
  0x25   :  { %v178_v32 = vmul.f32 0.125, %v152_v25  ;;  %v291_v33 = vsel %vm196_vm4, %v177_v26, %v290_v31  ;;  %v833_v48 = vpack.c.bf16 %v375_v47, %v374_v45  ;;  %vm376_vm10 = vcmask 261120   ;;  %v623_v21 = vld [vmem:[%s1215_s6 + $0x18] sm:$0xff]  ;;  %v624_v26 = vld [vmem:[%s1215_s6 + $0x20] sm:$0xff]  ;;  %v630_v44 = vld [vmem:[%s1215_s6 + $0x50] sm:$0xff] }
  0x26   :  { %v166_v34 = vadd.f32 %v165_v29, %v164_v22  ;;  %v173_v35 = vadd.f32 %v172_v30, %v171_v23  ;;  %v179_v36 = vmul.f32 0.125, %v159_v28  ;;  %v836_v55 = vpack.c.bf16 %v369_v52, %v368_v51  ;;  %v640_v22 = vld [vmem:[%s1215_s6 + $0xa0] sm:$0xff]  ;;  %v641_v23 = vld [vmem:[%s1215_s6 + $0xa8] sm:$0xff]  ;;  %v642_v28 = vld [vmem:[%s1215_s6 + $0xb0] sm:$0xff] }
  0x27   :  { %v292_v37 = vsel %vm198_vm5, %v178_v32, %v291_v33  ;;  %v839_v60 = vpack.c.bf16 %v371_v59, %v370_v58  ;;  %v841_v2 = vpack.c.bf16 %v528_v1, %v526_v63  ;;  %v847_v10 = vpack.c.bf16 %v531_v9, %v529_v8  ;;  %v643_v29 = vld [vmem:[%s1215_s6 + $0xb8] sm:$0xff]  ;;  %v626_v32 = vld [vmem:[%s1215_s6 + $0x30] sm:$0xff]  ;;  %v649_v47 = vld [vmem:[%s1215_s6 + $0xe8] sm:$0xff] }
  0x28   :  { %v180_v38 = vmul.f32 0.125, %v166_v34  ;;  %v181_v39 = vmul.f32 0.125, %v173_v35  ;;  %v293_v40 = vsel %vm200_vm6, %v179_v36, %v292_v37  ;;  %v849_v14 = vpack.c.bf16 %v637_v12, %v636_v11  ;;  %v627_v33 = vld [vmem:[%s1215_s6 + $0x38] sm:$0xff]  ;;  %v644_v34 = vld [vmem:[%s1215_s6 + $0xc0] sm:$0xff]  ;;  %v645_v35 = vld [vmem:[%s1215_s6 + $0xc8] sm:$0xff] }
  0x29   :  { %v851_v18 = vpack.c.bf16 %v621_v15, %v620_v13  ;;  %v853_v19 = vpack.c.bf16 %v639_v17, %v638_v16  ;;  %v855_v24 = vpack.c.bf16 %v623_v21, %v622_v20  ;;  %v857_v25 = vpack.c.bf16 %v641_v23, %v640_v22  ;;  %v631_v45 = vld [vmem:[%s1215_s6 + $0x58] sm:$0xff]  ;;  %v31_v52 = vld [vmem:[%s1213_s7 + $0x2] ss:$0 sm:$0xff]  ;;  %v633_v59 = vld [vmem:[%s1215_s6 + $0x68] sm:$0xff] }
  0x2a   :  { %v294_v41 = vsel %vm202_vm7, %v180_v38, %v293_v40  ;;  %850 = vmatprep.subr.bf16.mxu1 %v849_v14  ;;  %v859_v30 = vpack.c.bf16 %v625_v27, %v624_v26  ;;  %v861_v31 = vpack.c.bf16 %v643_v29, %v642_v28  ;;  %v863_v36 = vpack.c.bf16 %v627_v33, %v626_v32  ;;  %v628_v38 = vld [vmem:[%s1215_s6 + $0x40] sm:$0xff]  ;;  %v646_v40 = vld [vmem:[%s1215_s6 + $0xd0] sm:$0xff] }
  0x2b   :  { %v295_v42 = vsel %vm204_vm8, %v181_v39, %v294_v41  ;;  %852 = vmatpush3.bf16.msra.mxu1 %v851_v18  ;;  %v865_v37 = vpack.c.bf16 %v645_v35, %v644_v34  ;;  %v629_v39 = vld [vmem:[%s1215_s6 + $0x48] sm:$0xff]  ;;  %v647_v41 = vld [vmem:[%s1215_s6 + $0xd8] sm:$0xff]  ;;  %v632_v58 = vld [vmem:[%s1215_s6 + $0x60] sm:$0xff] }
  0x2c   :  { %799 = vmatmul.mubr.msk.f32.vlgmr.msra.gmra.mrb[2].mxu0 %vm117_vm9, %v295_v42  ;;  %854 = vmatprep.subr.bf16.mxu1 %v853_v19  ;;  %v867_v42 = vpack.c.bf16 %v629_v39, %v628_v38  ;;  %v869_v43 = vpack.c.bf16 %v647_v41, %v646_v40  ;;  %v634_v1 = vld [vmem:[%s1215_s6 + $0x70] sm:$0xff]  ;;  %v34_v17 = vld [vmem:[%s1213_s7 + $0x4] ss:$0 sm:$0xff] }
  0x2d   :  { %809 = vmatprep.mubr.msk.f32.mxu0 %vm885_vm1, %v886_v3  ;;  %831 = vmatpush3.bf16.msra.mxu0 %v830_v46  ;;  %v648_v46 = vld [vmem:[%s1215_s6 + $0xe0] sm:$0xff] }
  0x2e   :  { %832 = vmatprep.subr.bf16.mxu0 %v884_v0 }
  0x2f   :  { %856 = vmatpush3.bf16.msra.mxu1 %v855_v24 }
  0x30   :  { %858 = vmatprep.subr.bf16.mxu1 %v857_v25 }
  0x31   :  { %834 = vmatpush3.bf16.msra.mxu0 %v833_v48  ;;  %v871_v48 = vpack.c.bf16 %v631_v45, %v630_v44 }
  0x32   :  { %835 = vmatprep.subr.bf16.mxu0 %v884_v0 }
  0x33   :  { %860 = vmatpush3.bf16.msra.mxu1 %v859_v30 }
  0x34   :  { %862 = vmatprep.subr.bf16.mxu1 %v861_v31 }
  0x37   :  { %864 = vmatpush3.bf16.msra.mxu1 %v863_v36 }
  0x38   :  { %866 = vmatprep.subr.bf16.mxu1 %v865_v37 }
  0x3b   :  { %868 = vmatpush3.bf16.msra.mxu1 %v867_v42 }
  0x3c   :  { %870 = vmatprep.subr.bf16.mxu1 %v869_v43 }
  0x3f   :  { %872 = vmatpush3.bf16.msra.mxu1 %v871_v48 }
  0xec   :  { %v274_v49 = vpop.f32.mrb[0].mxu0 }
  0xed   :  { %v791_v50 = vpop.f32.mrb[1].mxu0  ;;  %v275_v62 = vadd.f32 %v274_v49, %v29_v61  ;;  %v873_v49 = vpack.c.bf16 %v649_v47, %v648_v46  ;;  %v650_v61 = vld [vmem:[%s1215_s6 + $0xf0] sm:$0xff] }
  0xef   :  { %874 = vmatprep.subr.bf16.mxu1 %v873_v49 }
  0xff   :  { %v364_v54 = vpop.f32.mrb[2].mxu0 }
 0x100   :  { %v365_v56 = vadd.f32 %v364_v54, %v30_v53  ;;  %v800_v57 = vpop.f32.mrb[3].mxu0 }
 0x102   :  { %810 = vmatmul.mubr.msk.f32.vlgmr.msra.gmra.mrb[4].mxu0 %vm376_vm10, %v365_v56 }
 0x103   :  { %837 = vmatpush3.bf16.msra.mxu0 %v836_v55  ;;  %820 = vmatprep.mubr.msk.f32.mxu0 %vm885_vm1, %v886_v3 }
 0x104   :  { %838 = vmatprep.subr.bf16.mxu0 %v884_v0  ;;  %v525_v0 = vld [vmem:[%s1214_s5] sm:$0xff] }
 0x105   :  { %v843_v5 = vpack.c.bf16 %v527_v4, %v525_v0  ;;  %v534_v4 = vlaneseq }
 0x107   :  { %840 = vmatpush3.bf16.msra.mxu0 %v839_v60  ;;  %v875_v60 = vpack.c.bf16 %v633_v59, %v632_v58 }
 0x108   :  { %842 = vmatprep.subr.bf16.mxu0 %v841_v2  ;;  %v635_v2 = vld [vmem:[%s1215_s6 + $0x78] sm:$0xff] }
 0x109   :  { %876 = vmatpush3.bf16.msra.mxu1 %v875_v60  ;;  %v879_v0 = vpack.c.bf16 %v635_v2, %v634_v1 }
 0x10a   :  { %821 = vmatmul.mubr.msk.f32.vlgmr.msra.gmra.mrb[6].mxu0 %vm376_vm10, %v275_v62  ;;  %v651_v62 = vld [vmem:[%s1215_s6 + $0xf8] sm:$0xff] }
 0x10b   :  { %611 = vmatprep.mubr.f32.mxu0 %v886_v3  ;;  %844 = vmatpush1.bf16.msra.mxu0 %v843_v5  ;;  %v530_v3 = vld [vmem:[%s1214_s5 + $0x28] sm:$0xff]  ;;  %v877_v63 = vpack.c.bf16 %v651_v62, %v650_v61  ;;  %v535_v5 = vshrl.u32 %v534_v4, 7 }
 0x10c   :  { %v845_v7 = vpack.c.bf16 %v532_v6, %v530_v3  ;;  %v727_v6 = vld [vmem:[%s1213_s7 + $0x3] ss:$8 sm:$0x3] }
 0x10d   :  { %878 = vmatprep.subr.bf16.mxu1 %v877_v63  ;;  %v536_v3 = vsub.s32 0, %v535_v5 }
 0x10e   :  { %846 = vmatprep.subr.bf16.mxu0 %v845_v7  ;;  %880 = vmatpush3.bf16.msra.mxu1 %v879_v0  ;;  %v540_v7 = vsub.s32 1, %v535_v5 }
 0x10f   :  { %848 = vmatpush1.bf16.msra.mxu0 %v847_v10  ;;  %v537_v8 = vrot.slane %v727_v6, %v536_v3 }
 0x110   :  { %v541_v9 = vrot.slane %v727_v6, %v540_v7 }
 0x1d5   :  { %v446_v50 = vpop.f32.mrb[4].mxu0 }
 0x1d6   :  { %v811_v51 = vpop.f32.mrb[5].mxu0 }
 0x1dd   :  { %v519_v53 = vpop.f32.mrb[6].mxu0 }
 0x1de   :  { %v520_v54 = vadd.f32 %v519_v53, %v446_v50  ;;  %v822_v55 = vpop.f32.mrb[7].mxu0 }
 0x1e0   :  { %v523_v56 = vadd.f32 %v520_v54, %v31_v52 }
 0x1e2   :  { %v524_v57 = vmax.f32 %v523_v56, 0.0 }
 0x1e4   :  { %732 = vmatmul.mubr.msk.f32.vlgmr.msra.gmra.mrb[8].mxu0 %vm376_vm10, %v524_v57 }
 0x2b7   :  { %v613_v10 = vpop.f32.mrb[8].mxu0 }
 0x2b8   :  { %v614_v11 = vadd.f32 %v613_v10, %v537_v8  ;;  %v615_v12 = vpop.f32.mrb[9].mxu0 }
 0x2b9   :  { %v616_v13 = vadd.f32 %v615_v12, %v541_v9 }
 0x2ba   :  { %v618_v15 = vmax.f32 %v614_v11, 0.0 }
 0x2bb   :  { %v619_v14 = vmax.f32 %v616_v13, 0.0 }
 0x2bd   :  { %716 = vmatprep.mubr.f32.mxu1 %v619_v14 }
 0x2be   :  { %717 = vmatmul.mubr.f32.vlgmr.msra.gmra.mrb[0].mxu1 %v618_v15 }
 0x391   :  { %v782_v16 = vpop.f32.mrb[0].mxu1 }
 0x392   :  { %v783_v18 = vpop.f32.mrb[1].mxu1 }
 0x393   :  { %v784_v19 = vadd.f32 %v783_v18, %v782_v16 }
 0x395   :  { %v719_v20 = vadd.f32 %v784_v19, %v34_v17 }
 0x397   :  { %722 = vst [vmem:[%s1216_s8] sm:$0xff] %v719_v20 }

</bundles_post_ra>
